<compile_context>
chip_gen: v7x
topology: tpu7x:2x2x1
jax: 0.10.0
libtpu: 0.0.40
codegen_flags: <defaults>
</compile_context>

<pallas_src>
import jax
import jax.numpy as jnp
from jax.experimental import pallas as pl
from jax.experimental.pallas import tpu as pltpu


def _round_up(n, m):
    return ((n + m - 1) // m) * m


def actor_kernel(x_ref, w1_ref, b1_ref, w2_ref, b2_ref, w3_ref, b3_ref, out_ref):
    # Feature-major: x is (obs_dim, tile_b); batch rides the lane axis.
    x = x_ref[...]

    # Layer 1: (64, obs_dim) @ (obs_dim, tile_b) + (64, 1), then tanh.
    h1 = jnp.dot(w1_ref[...], x, preferred_element_type=jnp.float32) + b1_ref[...]
    h1 = jnp.tanh(h1)

    # Layer 2: (32, 64) @ (64, tile_b) + (32, 1), then tanh.
    h2 = jnp.dot(w2_ref[...], h1, preferred_element_type=jnp.float32) + b2_ref[...]
    h2 = jnp.tanh(h2)

    # Layer 3: (2, 32) @ (32, tile_b) + (2, 1).
    out = jnp.dot(w3_ref[...], h2, preferred_element_type=jnp.float32) + b3_ref[...]

    # Row 0 = mean (stored as-is), row 1 = exp(log_std). Only the log_std row
    # goes through the EUP; both stores are full-lane-width.
    out_ref[0:1, :] = out[0:1, :]
    out_ref[1:2, :] = jnp.exp(out[1:2, :])


def actor_forward(x, params, *, block_b=4096):
    """x: [B, obs_dim] float32. Returns (means [B,1], stds [B,1])."""
    B, obs_dim = x.shape
    w1, b1, w2, b2, w3, b3 = (params["w1"], params["b1"], params["w2"],
                              params["b2"], params["w3"], params["b3"])
    d1, d2 = w1.shape[0], w2.shape[0]
    out_dim = w3.shape[0]  # = 2 (mean, log_std)

    # Batch lives on the lane axis -> tile must be a multiple of 128 lanes.
    tile_b = min(_round_up(block_b, 128), _round_up(B, 128))
    padded_b = _round_up(B, tile_b)

    # If everything fits in one block, split it into two parallel blocks so a
    # v7x chip can shard the batch across both TensorCores; on v5e/v6e this is
    # at most one extra ~0.35us grid step.
    if padded_b == tile_b and padded_b >= 256:
        tile_b = _round_up(padded_b // 2, 128)
        padded_b = 2 * tile_b

    xp = x
    if padded_b != B:
        xp = jnp.pad(x, ((0, padded_b - B), (0, 0)))
    xt = xp.T  # (obs_dim, padded_b), feature-major & lane-dense

    grid = (padded_b // tile_b,)

    def resident(a):
        # Constant index_map -> block never changes -> parameters stay
        # VMEM-resident across grid steps (no per-step re-DMA of ~10 KB).
        return pl.BlockSpec(a.shape, lambda i: (0,) * a.ndim)

    param_bytes = 4 * (w1.size + b1.size + w2.size + b2.size + w3.size + b3.size)
    cost = pl.CostEstimate(
        flops=2 * padded_b * (obs_dim * d1 + d1 * d2 + d2 * out_dim),
        transcendentals=padded_b * (d1 + d2 + out_dim // 2),
        bytes_accessed=4 * padded_b * (obs_dim + out_dim) + param_bytes,
    )

    out = pl.pallas_call(
        actor_kernel,
        out_shape=jax.ShapeDtypeStruct((out_dim, padded_b), jnp.float32),
        grid=grid,
        in_specs=[
            pl.BlockSpec((obs_dim, tile_b), lambda i: (0, i)),  # streamed activations
            resident(w1), resident(b1),
            resident(w2), resident(b2),
            resident(w3), resident(b3),
        ],
        out_specs=pl.BlockSpec((out_dim, tile_b), lambda i: (0, i)),
        compiler_params=pltpu.CompilerParams(
            dimension_semantics=("parallel",)),  # both TCs on v7x; no-op on v5e/v6e
        cost_estimate=cost,
    )(xt, w1, b1, w2, b2, w3, b3)

    y = out[:, :B].T  # (B, 2): col 0 = mean, col 1 = std
    return y[:, 0:1], y[:, 1:2]


def init_params(key, obs_dim=4, act_dim=1):
    """Deterministic PyTorch-Linear-style init (U[-1/sqrt(fan_in), 1/sqrt(fan_in)]).
    Weights are stored in native PyTorch [out, in] layout; biases are [out, 1]."""
    dims = [(obs_dim, 64), (64, 32), (32, act_dim * 2)]
    params = {}
    keys = jax.random.split(key, 2 * len(dims))
    for i, (fin, fout) in enumerate(dims):
        bound = 1.0 / jnp.sqrt(jnp.float32(fin))
        w = jax.random.uniform(keys[2 * i], (fout, fin), jnp.float32, -bound, bound)
        b = jax.random.uniform(keys[2 * i + 1], (fout, 1), jnp.float32, -bound, bound)
        params[f"w{i+1}"] = w
        params[f"b{i+1}"] = b
    return params


def actor_ref(x, params):
    """Pure-JAX reference for correctness checking (PyTorch layout: y = x @ W.T + b)."""
    h1 = jnp.tanh(x @ params["w1"].T + params["b1"].T)
    h2 = jnp.tanh(h1 @ params["w2"].T + params["b2"].T)
    out = h2 @ params["w3"].T + params["b3"].T
    return out[:, 0:1], jnp.exp(out[:, 1:2])


if __name__ == "__main__":
    key = jax.random.PRNGKey(0)
    pkey, xkey_small, xkey_big = jax.random.split(key, 3)

    obs_dim = 4   # CartPole observation: [x, x_dot, theta, theta_dot]
    act_dim = 1   # continuous cart force
    params = init_params(pkey, obs_dim=obs_dim, act_dim=act_dim)

    # Small-shape smoke test (single 128-lane block).
    batch = 8
    x = jax.random.normal(xkey_small, (batch, obs_dim), dtype=jnp.float32)
    means, stds = actor_forward(x, params)
    jax.block_until_ready((means, stds))
    means_r, stds_r = actor_ref(x, params)
    assert means.shape == (batch, 1) and stds.shape == (batch, 1)
    assert jnp.allclose(means, means_r, atol=1e-5, rtol=1e-5)
    assert jnp.allclose(stds, stds_r, atol=1e-5, rtol=1e-5)
    assert bool(jnp.all(stds > 0))

    # Batched rollout path: ragged batch padded to 1024 lanes, split into two
    # parallel 512-wide blocks (one per TensorCore on v7x).
    big_batch = 1000
    xb = jax.random.normal(xkey_big, (big_batch, obs_dim), dtype=jnp.float32)
    means_b, stds_b = actor_forward(xb, params)
    jax.block_until_ready((means_b, stds_b))
    means_br, stds_br = actor_ref(xb, params)
    assert means_b.shape == (big_batch, 1) and stds_b.shape == (big_batch, 1)
    assert jnp.allclose(means_b, means_br, atol=1e-5, rtol=1e-5)
    assert jnp.allclose(stds_b, stds_br, atol=1e-5, rtol=1e-5)
    assert bool(jnp.all(stds_b > 0))

    print("KERNEL_OK")
</pallas_src>

<mosaic_0001>
module attributes {stable_mosaic.version = 11 : i64} {
  func.func @actor_kernel(%arg0: i32, %arg1: memref<4x128xf32, #tpu.memory_space<vmem>>, %arg2: memref<64x4xf32, #tpu.memory_space<vmem>>, %arg3: memref<64x1xf32, #tpu.memory_space<vmem>>, %arg4: memref<32x64xf32, #tpu.memory_space<vmem>>, %arg5: memref<32x1xf32, #tpu.memory_space<vmem>>, %arg6: memref<2x32xf32, #tpu.memory_space<vmem>>, %arg7: memref<2x1xf32, #tpu.memory_space<vmem>>, %arg8: memref<2x128xf32, #tpu.memory_space<vmem>>) attributes {dimension_semantics = [#tpu.dimension_semantics<parallel>], iteration_bounds = array<i64: 1>, scalar_prefetch = 0 : i64, scratch_operands = 0 : i64, tpu.core_type = #tpu.core_type<tc>, window_params = [{transform_indices = @transform_0, window_bounds = array<i64: 4, 128>}, {pipeline_mode = #tpu.pipeline_mode<synchronous>, transform_indices = @transform_1, window_bounds = array<i64: 64, 4>}, {pipeline_mode = #tpu.pipeline_mode<synchronous>, transform_indices = @transform_2, window_bounds = array<i64: 64, 1>}, {pipeline_mode = #tpu.pipeline_mode<synchronous>, transform_indices = @transform_3, window_bounds = array<i64: 32, 64>}, {pipeline_mode = #tpu.pipeline_mode<synchronous>, transform_indices = @transform_4, window_bounds = array<i64: 32, 1>}, {pipeline_mode = #tpu.pipeline_mode<synchronous>, transform_indices = @transform_5, window_bounds = array<i64: 2, 32>}, {pipeline_mode = #tpu.pipeline_mode<synchronous>, transform_indices = @transform_6, window_bounds = array<i64: 2, 1>}, {transform_indices = @transform_7, window_bounds = array<i64: 2, 128>}]} {
    %c0 = arith.constant 0 : index
    %c0_0 = arith.constant 0 : index
    %0 = vector.load %arg1[%c0, %c0_0] : memref<4x128xf32, #tpu.memory_space<vmem>>, vector<4x128xf32>
    %c0_1 = arith.constant 0 : index
    %c0_2 = arith.constant 0 : index
    %1 = vector.load %arg2[%c0_1, %c0_2] : memref<64x4xf32, #tpu.memory_space<vmem>>, vector<64x4xf32>
    %cst = arith.constant dense<0.000000e+00> : vector<64x128xf32>
    %2 = tpu.matmul %1, %0, %cst {dimension_numbers = #tpu.dot_dimension_numbers<[1], [0], [0], [1], [0, 0, 1, 1], [], []>} : vector<64x4xf32>, vector<4x128xf32>, vector<64x128xf32> -> vector<64x128xf32>
    %c0_3 = arith.constant 0 : index
    %c0_4 = arith.constant 0 : index
    %3 = vector.load %arg3[%c0_3, %c0_4] : memref<64x1xf32, #tpu.memory_space<vmem>>, vector<64x1xf32>
    %4 = vector.broadcast %3 : vector<64x1xf32> to vector<64x128xf32>
    %5 = arith.addf %2, %4 : vector<64x128xf32>
    %6 = math.tanh %5 : vector<64x128xf32>
    %c0_5 = arith.constant 0 : index
    %c0_6 = arith.constant 0 : index
    %7 = vector.load %arg4[%c0_5, %c0_6] : memref<32x64xf32, #tpu.memory_space<vmem>>, vector<32x64xf32>
    %cst_7 = arith.constant dense<0.000000e+00> : vector<32x128xf32>
    %8 = tpu.matmul %7, %6, %cst_7 {dimension_numbers = #tpu.dot_dimension_numbers<[1], [0], [0], [1], [0, 0, 1, 1], [], []>} : vector<32x64xf32>, vector<64x128xf32>, vector<32x128xf32> -> vector<32x128xf32>
    %c0_8 = arith.constant 0 : index
    %c0_9 = arith.constant 0 : index
    %9 = vector.load %arg5[%c0_8, %c0_9] : memref<32x1xf32, #tpu.memory_space<vmem>>, vector<32x1xf32>
    %10 = vector.broadcast %9 : vector<32x1xf32> to vector<32x128xf32>
    %11 = arith.addf %8, %10 : vector<32x128xf32>
    %12 = math.tanh %11 : vector<32x128xf32>
    %c0_10 = arith.constant 0 : index
    %c0_11 = arith.constant 0 : index
    %13 = vector.load %arg6[%c0_10, %c0_11] : memref<2x32xf32, #tpu.memory_space<vmem>>, vector<2x32xf32>
    %cst_12 = arith.constant dense<0.000000e+00> : vector<2x128xf32>
    %14 = tpu.matmul %13, %12, %cst_12 {dimension_numbers = #tpu.dot_dimension_numbers<[1], [0], [0], [1], [0, 0, 1, 1], [], []>} : vector<2x32xf32>, vector<32x128xf32>, vector<2x128xf32> -> vector<2x128xf32>
    %c0_13 = arith.constant 0 : index
    %c0_14 = arith.constant 0 : index
    %15 = vector.load %arg7[%c0_13, %c0_14] : memref<2x1xf32, #tpu.memory_space<vmem>>, vector<2x1xf32>
    %16 = vector.broadcast %15 : vector<2x1xf32> to vector<2x128xf32>
    %17 = arith.addf %14, %16 : vector<2x128xf32>
    %18 = vector.extract_strided_slice %17 {offsets = [0, 0], sizes = [1, 128], strides = [1, 1]} : vector<2x128xf32> to vector<1x128xf32>
    %c0_15 = arith.constant 0 : index
    %c0_16 = arith.constant 0 : index
    %19 = vector.load %arg8[%c0_15, %c0_16] : memref<2x128xf32, #tpu.memory_space<vmem>>, vector<1x128xf32>
    tpu.vector_store %arg8[%c0_15, %c0_16], %18 {strides = array<i32>} : memref<2x128xf32, #tpu.memory_space<vmem>>, vector<1x128xf32>,
    %20 = vector.extract_strided_slice %17 {offsets = [1, 0], sizes = [1, 128], strides = [1, 1]} : vector<2x128xf32> to vector<1x128xf32>
    %21 = math.exp %20 : vector<1x128xf32>
    %c1 = arith.constant 1 : index
    %c0_17 = arith.constant 0 : index
    %22 = vector.load %arg8[%c1, %c0_17] : memref<2x128xf32, #tpu.memory_space<vmem>>, vector<1x128xf32>
    tpu.vector_store %arg8[%c1, %c0_17], %21 {strides = array<i32>} : memref<2x128xf32, #tpu.memory_space<vmem>>, vector<1x128xf32>,
    return
  }
  func.func @transform_0(%arg0: i32) -> (i32, i32) {
    %c0_i32 = arith.constant 0 : i32
    %c0_i32_0 = arith.constant 0 : i32
    return %c0_i32, %arg0 : i32, i32
  }
  func.func @transform_1(%arg0: i32) -> (i32, i32) {
    %c0_i32 = arith.constant 0 : i32
    %c0_i32_0 = arith.constant 0 : i32
    %c0_i32_1 = arith.constant 0 : i32
    return %c0_i32, %c0_i32_0 : i32, i32
  }
  func.func @transform_2(%arg0: i32) -> (i32, i32) {
    %c0_i32 = arith.constant 0 : i32
    %c0_i32_0 = arith.constant 0 : i32
    %c0_i32_1 = arith.constant 0 : i32
    return %c0_i32, %c0_i32_0 : i32, i32
  }
  func.func @transform_3(%arg0: i32) -> (i32, i32) {
    %c0_i32 = arith.constant 0 : i32
    %c0_i32_0 = arith.constant 0 : i32
    %c0_i32_1 = arith.constant 0 : i32
    return %c0_i32, %c0_i32_0 : i32, i32
  }
  func.func @transform_4(%arg0: i32) -> (i32, i32) {
    %c0_i32 = arith.constant 0 : i32
    %c0_i32_0 = arith.constant 0 : i32
    %c0_i32_1 = arith.constant 0 : i32
    return %c0_i32, %c0_i32_0 : i32, i32
  }
  func.func @transform_5(%arg0: i32) -> (i32, i32) {
    %c0_i32 = arith.constant 0 : i32
    %c0_i32_0 = arith.constant 0 : i32
    %c0_i32_1 = arith.constant 0 : i32
    return %c0_i32, %c0_i32_0 : i32, i32
  }
  func.func @transform_6(%arg0: i32) -> (i32, i32) {
    %c0_i32 = arith.constant 0 : i32
    %c0_i32_0 = arith.constant 0 : i32
    %c0_i32_1 = arith.constant 0 : i32
    return %c0_i32, %c0_i32_0 : i32, i32
  }
  func.func @transform_7(%arg0: i32) -> (i32, i32) {
    %c0_i32 = arith.constant 0 : i32
    %c0_i32_0 = arith.constant 0 : i32
    return %c0_i32, %arg0 : i32, i32
  }
}

</mosaic_0001>

<bundles_post_ra>
// kernel: tpu_custom_call.1
= control target key start
LH: loop header
LB: loop body
LE: loop exit
PB: predicated region body
PF: predicated region fallthrough
CT: control target
= control target key end

     0   :  { %vm109_vm0 = vcmask 1043456   ;;  %vm84_vm1 = vcmask 31744   ;;  %v621_v4 = vmov 0   ;;  %s771_s0 = inlined_call_operand.vmem [shape: f32[4,128], index: 0, kind: input, shape index: {}]   ;;  %s772_s1 = inlined_call_operand.vmem [shape: f32[64,4], index: 1, kind: input, shape index: {}]   ;;  %s773_s2 = inlined_call_operand.vmem [shape: f32[64,1], index: 2, kind: input, shape index: {}]   ;;  %s774_s3 = inlined_call_operand.vmem [shape: f32[32,64], index: 3, kind: input, shape index: {}]   ;;  %s775_s4 = inlined_call_operand.vmem [shape: f32[32,1], index: 4, kind: input, shape index: {}]   ;;  %s776_s5 = inlined_call_operand.vmem [shape: f32[2,32], index: 5, kind: input, shape index: {}]   ;;  %s777_s6 = inlined_call_operand.vmem [shape: f32[2,1], index: 6, kind: input, shape index: {}]   ;;  %s778_s7 = inlined_call_operand.hbm [shape: f32[2,128], index: 7, kind: output, shape index: {}]  }
   0x1   :  { %v27_v0 = vld [vmem:[%s771_s0] sm:$0xf]  ;;  %v29_v2 = vld [vmem:[%s772_s1 + $0x8] sm:$0xff]  ;;  %v30_v3 = vld [vmem:[%s772_s1 + $0x10] sm:$0xff]  ;;  %569 = vset.pattern.permute.xlu0 %v621_v4  ;;  %570 = vset.pattern.permute.xlu1 %v621_v4 }
   0x2   :  { %v28_v1 = vld [vmem:[%s772_s1] sm:$0xff]  ;;  %495 = vmatprep.subr.msk.mxu0 %vm109_vm0, %v27_v0  ;;  %v38_v6 = vld [vmem:[%s773_s2 + $0x10] sm:$0xff]  ;;  %v31_v7 = vld [vmem:[%s772_s1 + $0x18] sm:$0xff] }
   0x3   :  { %497 = vmatprep.mubr.msk.f32.mxu0 %vm84_vm1, %v28_v1  ;;  %496 = vmatpush3.msk.msra.mxu0 %vm109_vm0, %v27_v0  ;;  %v36_v5 = vld [vmem:[%s773_s2] sm:$0xff]  ;;  %v37_v9 = vld [vmem:[%s773_s2 + $0x8] sm:$0xff]  ;;  %v39_v10 = vld [vmem:[%s773_s2 + $0x18] sm:$0xff] }
   0x4   :  { %498 = vmatmul.mubr.msk.f32.vlgmr.msra.gmra.mrb[0].mxu0 %vm84_vm1, %v29_v2  ;;  %46 = vperm.xlu0 %569, %v36_v5   ;;  %v32_v8 = vld [vmem:[%s772_s1 + $0x20] sm:$0xff] }
   0x5   :  { %500 = vmatprep.mubr.msk.f32.mxu0 %vm84_vm1, %v30_v3  ;;  %56 = vperm.xlu1 %570, %v38_v6  }
   0x8   :  { %501 = vmatmul.mubr.msk.f32.gmra.mrb[2].mxu0 %vm84_vm1, %v31_v7 }
   0x9   :  { %12 = vsyncpa [#allocation3], 0  ;;  %503 = vmatprep.mubr.msk.f32.mxu0 %vm84_vm1, %v32_v8  ;;  %v33_v11 = vld [vmem:[%s772_s1 + $0x28] sm:$0xff]  ;;  %51 = vperm.xlu0 %569, %v37_v9   ;;  %v34_v12 = vld [vmem:[%s772_s1 + $0x30] sm:$0xff]  ;;  %vm254_vm2 = vcmask 523264   ;;  %v622_v63 = vmov 0.0|0.0  }
   0xa   :  { %v40_v13 = vld [vmem:[%s773_s2 + $0x20] sm:$0xff]  ;;  %61 = vperm.xlu1 %570, %v39_v10   ;;  %v41_v14 = vld [vmem:[%s773_s2 + $0x28] sm:$0xff]  ;;  %v35_v15 = vld [vmem:[%s772_s1 + $0x38] sm:$0xff]  ;;  %558 = vmatprep.subr.bf16.mxu0 %v622_v63  ;;  %vm623_vm3 = vmmov 0   ;;  %v624_v0 = vmov 0.0   ;;  %vm363_vm4 = vcmask 261120  }
   0xb   :  { %v42_v16 = vld [vmem:[%s773_s2 + $0x30] sm:$0xff]  ;;  %v43_v17 = vld [vmem:[%s773_s2 + $0x38] sm:$0xff]  ;;  %v230_v18 = vld [vmem:[%s775_s4] sm:$0xff]  ;;  %s625_s25 = smov [#allocation2]  }
   0xc   :  { %504 = vmatmul.mubr.msk.f32.gmra.mrb[4].mxu0 %vm84_vm1, %v33_v11  ;;  %v231_v19 = vld [vmem:[%s775_s4 + $0x8] sm:$0xff]  ;;  %v232_v20 = vld [vmem:[%s775_s4 + $0x10] sm:$0xff]  ;;  %v233_v21 = vld [vmem:[%s775_s4 + $0x18] sm:$0xff]  ;;  %s447_s26 = sshll.u32 %s625_s25, 4  ;;  %s448_s26 = int_to_ptr.vmem [resolvable:$true] %s447_s26 }
   0xd   :  { %506 = vmatprep.mubr.msk.f32.mxu0 %vm84_vm1, %v34_v12  ;;  %66 = vperm.xlu0 %569, %v40_v13   ;;  %v357_v22 = vld [vmem:[%s777_s6] sm:$0x3]  ;;  %v227_v60 = vld [vmem:[%s774_s3 + $0x8] sm:$0xff]  ;;  %v228_v61 = vld [vmem:[%s774_s3 + $0x10] sm:$0xff]  ;;  %s597_s27 = scalar_lea.vmem %s448_s26, 32  ;;  %p602_p1 = scmp.lt.s32.totalorder %s448_s26, %s448_s26 }
   0xe   :  { %71 = vperm.xlu1 %570, %v41_v14   ;;  %v226_v23 = vld [vmem:[%s774_s3] sm:$0xff]  ;;  %v229_v62 = vld [vmem:[%s774_s3 + $0x18] sm:$0xff]  ;;  %p598_p0 = scmp.ne.s32.totalorder %s448_s26, %s597_s27  ;;  %p603_p2 = scmp.lt.s32.totalorder %s597_s27, %s597_s27 }
   0xf   :  { %525 = vmatprep.mubr.msk.f32.mxu1 %vm254_vm2, %v226_v23 }
  0x10   :  { %507 = vmatmul.mubr.msk.f32.gmra.mrb[6].mxu0 %vm84_vm1, %v35_v15  ;;  %p604_p3 = por %p603_p2, %p602_p1 }
  0x11   :  { %76 = vperm.xlu0 %569, %v42_v16   ;;  %539 = vmatprep.mubr.msk.f32.mxu0 %vm623_vm3, %v624_v0 }
  0x12   :  { %81 = vperm.xlu1 %570, %v43_v17   ;;  %p605_p4 = pnand %p604_p3, %p598_p0 }
  0x15   :  { %236 = vperm.xlu0 %569, %v230_v18  }
  0x16   :  { %241 = vperm.xlu1 %570, %v231_v19   ;;  %v356_v19 = vld [vmem:[%s776_s5] sm:$0x3] }
  0x19   :  { %246 = vperm.xlu0 %569, %v232_v20  }
  0x1a   :  { %251 = vperm.xlu1 %570, %v233_v21  }
  0x1d   :  { %360 = vperm.xlu0 %569, %v357_v22  }
  0x83   :  { %v47_v24 = vpop.permute.xlu0 %46 }
  0x84   :  { %v57_v25 = vpop.permute.xlu1 %56 }
  0x88   :  { %v52_v26 = vpop.permute.xlu0 %51 }
  0x89   :  { %v62_v27 = vpop.permute.xlu1 %61 }
  0x8c   :  { %v67_v37 = vpop.permute.xlu0 %66 }
  0x8d   :  { %v72_v35 = vpop.permute.xlu1 %71 }
  0x90   :  { %v77_v45 = vpop.permute.xlu0 %76 }
  0x91   :  { %v82_v42 = vpop.permute.xlu1 %81 }
  0x94   :  { %v237_v2 = vpop.permute.xlu0 %236 }
  0x95   :  { %v242_v1 = vpop.permute.xlu1 %241 }
  0x98   :  { %v247_v9 = vpop.permute.xlu0 %246 }
  0x99   :  { %v252_v7 = vpop.permute.xlu1 %251 }
  0x9c   :  { %v361_v20 = vpop.permute.xlu0 %360 }
  0xd7   :  { %v499_v28 = vpop.f32.mrb[0].mxu0 }
  0xd8   :  { %v185_v29 = vadd.f32 %v499_v28, %v52_v26  ;;  %v179_v30 = vpop.f32.mrb[1].mxu0 }
  0xd9   :  { %v180_v31 = vadd.f32 %v179_v30, %v47_v24 }
  0xda   :  { %571 = vtanh.f32 %v185_v29 }
  0xdb   :  { %573 = vtanh.f32 %v180_v31  ;;  %v502_v32 = vpop.f32.mrb[2].mxu0 }
  0xdc   :  { %v195_v33 = vadd.f32 %v502_v32, %v62_v27  ;;  %v189_v34 = vpop.f32.mrb[3].mxu0 }
  0xdd   :  { %v190_v36 = vadd.f32 %v189_v34, %v57_v25 }
  0xde   :  { %575 = vtanh.f32 %v195_v33 }
  0xdf   :  { %577 = vtanh.f32 %v190_v36  ;;  %v505_v38 = vpop.f32.mrb[4].mxu0 }
  0xe0   :  { %v205_v39 = vadd.f32 %v505_v38, %v72_v35  ;;  %v199_v40 = vpop.f32.mrb[5].mxu0 }
  0xe1   :  { %v200_v41 = vadd.f32 %v199_v40, %v67_v37 }
  0xe2   :  { %579 = vtanh.f32 %v205_v39 }
  0xe3   :  { %581 = vtanh.f32 %v200_v41  ;;  %v508_v43 = vpop.f32.mrb[6].mxu0 }
  0xe4   :  { %v572_v44 = vpop.eup %571  ;;  %v215_v46 = vadd.f32 %v508_v43, %v82_v42  ;;  %v209_v47 = vpop.f32.mrb[7].mxu0 }
  0xe5   :  { %v574_v48 = vpop.eup %573  ;;  %v210_v49 = vadd.f32 %v209_v47, %v77_v45 }
  0xe6   :  { %583 = vtanh.f32 %v215_v46  ;;  %v542_v50 = vpack.c.bf16 %v572_v44, %v574_v48 }
  0xe7   :  { %585 = vtanh.f32 %v210_v49 }
  0xe8   :  { %v576_v51 = vpop.eup %575  ;;  %543 = vmatprep.subr.bf16.mxu1 %v542_v50 }
  0xe9   :  { %v578_v52 = vpop.eup %577  ;;  %545 = vmatpush3.bf16.msra.mxu1 %v542_v50 }
  0xea   :  { %v546_v53 = vpack.c.bf16 %v576_v51, %v578_v52 }
  0xec   :  { %v580_v54 = vpop.eup %579  ;;  %547 = vmatprep.subr.bf16.mxu1 %v546_v53 }
  0xed   :  { %v582_v55 = vpop.eup %581  ;;  %549 = vmatpush3.bf16.msra.mxu1 %v546_v53 }
  0xee   :  { %v550_v56 = vpack.c.bf16 %v580_v54, %v582_v55 }
  0xf0   :  { %v584_v57 = vpop.eup %583  ;;  %551 = vmatprep.subr.bf16.mxu1 %v550_v56 }
  0xf1   :  { %v586_v58 = vpop.eup %585  ;;  %553 = vmatpush3.bf16.msra.mxu1 %v550_v56 }
  0xf2   :  { %v554_v59 = vpack.c.bf16 %v584_v57, %v586_v58 }
  0xf4   :  { %555 = vmatprep.subr.bf16.mxu1 %v554_v59 }
  0xf5   :  { %557 = vmatpush3.bf16.msra.mxu1 %v554_v59 }
  0xf8   :  { %526 = vmatmul.mubr.msk.f32.vlgmr.msra.gmra.mrb[0].mxu1 %vm254_vm2, %v227_v60 }
  0xf9   :  { %528 = vmatprep.mubr.msk.f32.mxu1 %vm254_vm2, %v228_v61 }
  0xfc   :  { %529 = vmatmul.mubr.msk.f32.gmra.mrb[2].mxu1 %vm254_vm2, %v229_v62 }
 0x1cb   :  { %v527_v3 = vpop.f32.mrb[0].mxu1 }
 0x1cc   :  { %v339_v4 = vadd.f32 %v527_v3, %v242_v1  ;;  %v333_v5 = vpop.f32.mrb[1].mxu1 }
 0x1cd   :  { %v334_v6 = vadd.f32 %v333_v5, %v237_v2 }
 0x1ce   :  { %587 = vtanh.f32 %v339_v4 }
 0x1cf   :  { %589 = vtanh.f32 %v334_v6  ;;  %v530_v8 = vpop.f32.mrb[2].mxu1 }
 0x1d0   :  { %v349_v10 = vadd.f32 %v530_v8, %v252_v7  ;;  %v343_v11 = vpop.f32.mrb[3].mxu1 }
 0x1d1   :  { %v344_v12 = vadd.f32 %v343_v11, %v247_v9 }
 0x1d2   :  { %591 = vtanh.f32 %v349_v10 }
 0x1d3   :  { %593 = vtanh.f32 %v344_v12 }
 0x1d8   :  { %v588_v13 = vpop.eup %587 }
 0x1d9   :  { %v590_v14 = vpop.eup %589 }
 0x1da   :  { %v559_v15 = vpack.c.bf16 %v588_v13, %v590_v14 }
 0x1dc   :  { %v592_v16 = vpop.eup %591  ;;  %560 = vmatpush3.bf16.msra.mxu0 %v559_v15 }
 0x1dd   :  { %v594_v17 = vpop.eup %593  ;;  %561 = vmatprep.subr.bf16.mxu0 %v622_v63 }
 0x1de   :  { %v562_v18 = vpack.c.bf16 %v592_v16, %v594_v17 }
 0x1e0   :  { %563 = vmatpush3.bf16.msra.mxu0 %v562_v18 }
 0x1e3   :  { %540 = vmatmul.mubr.msk.f32.vlgmr.msra.gmra.mrb[8].mxu0 %vm363_vm4, %v356_v19 }
 0x2b6   :  { %v433_v21 = vpop.f32.mrb[8].mxu0 }
 0x2b7   :  { %v434_v22 = vadd.f32 %v433_v21, %v361_v20  ;;  %v541_v23 = vpop.f32.mrb[9].mxu0 }
 0x2b9   :  { %437 = vst [vmem:[#allocation2] sm:$0x1] %v434_v22  ;;  %v438_v24 = vmul.f32 1.442695, %v434_v22 }
 0x2bb   :  { %595 = vpow2.f32 %v438_v24 }
 0x2c5   :  { %v596_v25 = vpop.eup %595 }
 0x2c6   :  { %440 = vst [vmem:[#allocation2] sm:$0x2] %v596_v25 }
 0x2c7   :  { %608 = shalt.err (!%p605_p4)
}
 0x2c8   :  { %s609_s29 = scalar_lea.hbm %s778_s7, 32 }
 0x2c9   :  { %p610_p5 = scmp.ne.s32.totalorder %s778_s7, %s609_s29  ;;  %p613_p6 = scmp.lt.u32.totalorder %s609_s29, %s778_s7 }
 0x2cb   :  { %p615_p7 = pnand %p613_p6, %p610_p5 }
 0x2cd   :  { %618 = shalt.err (!%p615_p7)
}
 0x2ce   :  { %450 = dma.vmem_to_hbm [thread:$0]  %s448_s26, 32, %s778_s7, [#allocation3]  }
 0x2cf   :  { %619 = dma.done.wait [#allocation3], 32  }
 0x2d0   :  { %620 = vsyncadd [#allocation3], 4294967264 }
 0x2d1   :  { %454 = vsyncpa [#allocation3], 1 }

</bundles_post_ra>
